<compile_context>
chip_gen: v7x
topology: tpu7x:2x2x1
jax: 0.10.0
libtpu: 0.0.40
codegen_flags: <defaults>
</compile_context>

<pallas_src>
import jax
import jax.numpy as jnp
import numpy as np
from jax.experimental import pallas as pl
from jax.experimental.pallas import tpu as pltpu

_LANE = 128
_TARGET_SUBLANES = 1024   # ~131072 elems / channel / step  (~2.6 MiB HBM traffic per step)


# ------------------------------ Pallas kernels ------------------------------ #

def _hsv_kernel_dense(x_ref, o_ref):
    # x_ref: (Bb, 3, Sb, 128)  rows = R,G,B ; o_ref: (Bb, 2, Sb, 128) rows = V,S
    r = x_ref[:, 0:1].astype(jnp.float32)
    g = x_ref[:, 1:2].astype(jnp.float32)
    b = x_ref[:, 2:3].astype(jnp.float32)
    max_c = jnp.maximum(jnp.maximum(r, g), b)          # pairwise VPU max (no XLU reduce)
    min_c = jnp.minimum(jnp.minimum(r, g), b)
    diff = max_c - min_c
    s = jnp.where(max_c == 0.0, jnp.zeros_like(max_c), diff / max_c)
    o_ref[:, 0:1] = max_c                               # V, stored directly
    o_ref[:, 1:2] = s                                   # S, stored directly


def _hsv_kernel_flat(x_ref, o_ref):
    # Fallback layout when HW % 128 != 0.
    # x_ref: (Bb, 3, T) ; o_ref: (Bb, 2, T)
    r = x_ref[:, 0:1].astype(jnp.float32)
    g = x_ref[:, 1:2].astype(jnp.float32)
    b = x_ref[:, 2:3].astype(jnp.float32)
    max_c = jnp.maximum(jnp.maximum(r, g), b)
    min_c = jnp.minimum(jnp.minimum(r, g), b)
    diff = max_c - min_c
    s = jnp.where(max_c == 0.0, jnp.zeros_like(max_c), diff / max_c)
    o_ref[:, 0:1] = max_c
    o_ref[:, 1:2] = s


# --------------------------------- Wrapper ---------------------------------- #

@jax.jit
def hsv_forward(x_nchw):
    """x_nchw: (B, 3, H, W) RGB -> (B, 2, H, W) = concat([V, S], channel dim)."""
    B, C, H, W = x_nchw.shape
    assert C == 3, "HSV expects a 3-channel (RGB) input"
    HW = H * W
    params = pltpu.CompilerParams(dimension_semantics=("parallel", "parallel"))

    if HW % _LANE == 0:
        # Sublane-dense path: (B, 3, HW//128, 128) slabs, 100% vreg utilization.
        S = HW // _LANE
        Sb = S if S <= _TARGET_SUBLANES else _TARGET_SUBLANES   # mult of 8 or full dim
        Bb = min(B, max(1, _TARGET_SUBLANES // Sb))             # fold batch for small images
        x = x_nchw.reshape(B, 3, S, _LANE)                      # free, stays NCHW order
        out = pl.pallas_call(
            _hsv_kernel_dense,
            out_shape=jax.ShapeDtypeStruct((B, 2, S, _LANE), jnp.float32),
            grid=(pl.cdiv(B, Bb), pl.cdiv(S, Sb)),
            in_specs=[pl.BlockSpec((Bb, 3, Sb, _LANE), lambda i, j: (i, 0, j, 0))],
            out_specs=pl.BlockSpec((Bb, 2, Sb, _LANE), lambda i, j: (i, 0, j, 0)),
            compiler_params=params,
        )(x)
        return out.reshape(B, 2, H, W)

    # Fallback: HW not a multiple of 128 -> flat spatial axis on the lanes.
    T = HW if HW <= 65536 else 32768                    # full dim or 128-multiple tile
    Bb = min(B, max(1, (_TARGET_SUBLANES * _LANE) // T))
    x = x_nchw.reshape(B, 3, HW)
    out = pl.pallas_call(
        _hsv_kernel_flat,
        out_shape=jax.ShapeDtypeStruct((B, 2, HW), jnp.float32),
        grid=(pl.cdiv(B, Bb), pl.cdiv(HW, T)),
        in_specs=[pl.BlockSpec((Bb, 3, T), lambda i, j: (i, 0, j))],
        out_specs=pl.BlockSpec((Bb, 2, T), lambda i, j: (i, 0, j)),
        compiler_params=params,
    )(x)
    return out.reshape(B, 2, H, W)


# --------------------------- Pure-JAX reference ----------------------------- #

def _reference(x_nchw):
    x = x_nchw.astype(jnp.float32)
    max_c = jnp.max(x, axis=1, keepdims=True)
    min_c = jnp.min(x, axis=1, keepdims=True)
    diff = max_c - min_c
    s = jnp.where(max_c == 0.0, jnp.zeros_like(max_c), diff / max_c)
    v = max_c
    return jnp.concatenate([v, s], axis=1)


# ----------------------------------- main ----------------------------------- #

if __name__ == "__main__":
    B, C, H, W = 2, 3, 16, 16
    key = jax.random.PRNGKey(0)
    x = jax.random.uniform(key, (B, C, H, W), jnp.float32)   # RGB in [0, 1)
    # Exercise the max_c == 0 branch on one pixel.
    x = x.at[0, :, 0, 0].set(0.0)

    out = jax.block_until_ready(hsv_forward(x))
    ref = jax.block_until_ready(_reference(x))

    assert out.shape == (B, 2, H, W)
    np.testing.assert_allclose(np.asarray(out), np.asarray(ref), rtol=1e-6, atol=1e-6)
    print("KERNEL_OK")
</pallas_src>

<mosaic_0001>
module attributes {stable_mosaic.version = 11 : i64} {
  func.func @_hsv_kernel_dense(%arg0: i32, %arg1: i32, %arg2: memref<2x3x2x128xf32, #tpu.memory_space<vmem>>, %arg3: memref<2x2x2x128xf32, #tpu.memory_space<vmem>>) attributes {dimension_semantics = [#tpu.dimension_semantics<parallel>, #tpu.dimension_semantics<parallel>], iteration_bounds = array<i64: 1, 1>, scalar_prefetch = 0 : i64, scratch_operands = 0 : i64, tpu.core_type = #tpu.core_type<tc>, window_params = [{transform_indices = @transform_0, window_bounds = array<i64: 2, 3, 2, 128>}, {transform_indices = @transform_1, window_bounds = array<i64: 2, 2, 2, 128>}]} {
    %c0 = arith.constant 0 : index
    %c0_0 = arith.constant 0 : index
    %c0_1 = arith.constant 0 : index
    %c0_2 = arith.constant 0 : index
    %0 = vector.load %arg2[%c0, %c0_0, %c0_1, %c0_2] : memref<2x3x2x128xf32, #tpu.memory_space<vmem>>, vector<2x1x2x128xf32>
    %c0_3 = arith.constant 0 : index
    %c1 = arith.constant 1 : index
    %c0_4 = arith.constant 0 : index
    %c0_5 = arith.constant 0 : index
    %1 = vector.load %arg2[%c0_3, %c1, %c0_4, %c0_5] : memref<2x3x2x128xf32, #tpu.memory_space<vmem>>, vector<2x1x2x128xf32>
    %c0_6 = arith.constant 0 : index
    %c2 = arith.constant 2 : index
    %c0_7 = arith.constant 0 : index
    %c0_8 = arith.constant 0 : index
    %2 = vector.load %arg2[%c0_6, %c2, %c0_7, %c0_8] : memref<2x3x2x128xf32, #tpu.memory_space<vmem>>, vector<2x1x2x128xf32>
    %3 = arith.maximumf %0, %1 : vector<2x1x2x128xf32>
    %4 = arith.maximumf %3, %2 : vector<2x1x2x128xf32>
    %5 = arith.minimumf %0, %1 : vector<2x1x2x128xf32>
    %6 = arith.minimumf %5, %2 : vector<2x1x2x128xf32>
    %7 = arith.subf %4, %6 : vector<2x1x2x128xf32>
    %cst = arith.constant 0.000000e+00 : f32
    %8 = vector.broadcast %cst : f32 to vector<2x1x2x128xf32>
    %9 = arith.cmpf oeq, %4, %8 : vector<2x1x2x128xf32>
    %cst_9 = arith.constant 0.000000e+00 : f32
    %10 = vector.broadcast %cst_9 : f32 to vector<2x1x2x128xf32>
    %11 = arith.divf %7, %4 : vector<2x1x2x128xf32>
    %12 = arith.select %9, %10, %11 : vector<2x1x2x128xi1>, vector<2x1x2x128xf32>
    %c0_10 = arith.constant 0 : index
    %c0_11 = arith.constant 0 : index
    %c0_12 = arith.constant 0 : index
    %c0_13 = arith.constant 0 : index
    %13 = vector.load %arg3[%c0_10, %c0_11, %c0_12, %c0_13] : memref<2x2x2x128xf32, #tpu.memory_space<vmem>>, vector<2x1x2x128xf32>
    tpu.vector_store %arg3[%c0_10, %c0_11, %c0_12, %c0_13], %4 {strides = array<i32>} : memref<2x2x2x128xf32, #tpu.memory_space<vmem>>, vector<2x1x2x128xf32>,
    %c0_14 = arith.constant 0 : index
    %c1_15 = arith.constant 1 : index
    %c0_16 = arith.constant 0 : index
    %c0_17 = arith.constant 0 : index
    %14 = vector.load %arg3[%c0_14, %c1_15, %c0_16, %c0_17] : memref<2x2x2x128xf32, #tpu.memory_space<vmem>>, vector<2x1x2x128xf32>
    tpu.vector_store %arg3[%c0_14, %c1_15, %c0_16, %c0_17], %12 {strides = array<i32>} : memref<2x2x2x128xf32, #tpu.memory_space<vmem>>, vector<2x1x2x128xf32>,
    return
  }
  func.func @transform_0(%arg0: i32, %arg1: i32) -> (i32, i32, i32, i32) {
    %c0_i32 = arith.constant 0 : i32
    %c0_i32_0 = arith.constant 0 : i32
    %c0_i32_1 = arith.constant 0 : i32
    return %arg0, %c0_i32, %arg1, %c0_i32_0 : i32, i32, i32, i32
  }
  func.func @transform_1(%arg0: i32, %arg1: i32) -> (i32, i32, i32, i32) {
    %c0_i32 = arith.constant 0 : i32
    %c0_i32_0 = arith.constant 0 : i32
    %c0_i32_1 = arith.constant 0 : i32
    return %arg0, %c0_i32, %arg1, %c0_i32_0 : i32, i32, i32, i32
  }
}

</mosaic_0001>

<bundles_post_ra>
// kernel: hsv_forward.1
= control target key start
LH: loop header
LB: loop body
LE: loop exit
PB: predicated region body
PF: predicated region fallthrough
CT: control target
= control target key end

     0   :  { %s93_s0 = inlined_call_operand.vmem [shape: f32[2,3,2,128], index: 0, kind: input, shape index: {}]   ;;  %s94_s1 = inlined_call_operand.vmem [shape: f32[2,2,2,128], index: 1, kind: output, shape index: {}]  }
   0x1   :  { %v8_v0 = vld [vmem:[%s93_s0] sm:$0x3]  ;;  %v43_v1 = vld [vmem:[%s93_s0 + $0x2] sm:$0x3]  ;;  %v45_v2 = vld [vmem:[%s93_s0 + $0x4] sm:$0x3] }
   0x2   :  { %v16_v3 = vmax.f32 %v8_v0, %v43_v1  ;;  %v9_v4 = vld [vmem:[%s93_s0 + $0x6] sm:$0x3]  ;;  %v44_v5 = vld [vmem:[%s93_s0 + $0x8] sm:$0x3]  ;;  %v46_v6 = vld [vmem:[%s93_s0 + $0xa] sm:$0x3]  ;;  %v20_v10 = vmin.f32 %v8_v0, %v43_v1 }
   0x3   :  { %v17_v7 = vmax.f32 %v9_v4, %v44_v5  ;;  %v21_v11 = vmin.f32 %v9_v4, %v44_v5 }
   0x4   :  { %v18_v8 = vmax.f32 %v16_v3, %v45_v2  ;;  %v22_v12 = vmin.f32 %v20_v10, %v45_v2 }
   0x5   :  { %v19_v9 = vmax.f32 %v17_v7, %v46_v6  ;;  %v23_v13 = vmin.f32 %v21_v11, %v46_v6 }
   0x6   :  { %34 = vst [vmem:[%s94_s1] sm:$0x3] %v18_v8  ;;  %49 = vrcp.f32 %v18_v8  ;;  %v24_v14 = vsub.f32 %v18_v8, %v22_v12  ;;  %vm26_vm0 = vcmp.eq.f32.partialorder %v18_v8, 0.0 }
   0x7   :  { %35 = vst [vmem:[%s94_s1 + $0x4] sm:$0x3] %v19_v9  ;;  %51 = vrcp.f32 %v19_v9  ;;  %v25_v15 = vsub.f32 %v19_v9, %v23_v13  ;;  %vm27_vm1 = vcmp.eq.f32.partialorder %v19_v9, 0.0 }
  0x10   :  { %v50_v16 = vpop.eup %49 }
  0x11   :  { %v52_v17 = vpop.eup %51  ;;  %v29_v18 = vmul.f32 %v50_v16, %v24_v14 }
  0x12   :  { %v31_v19 = vmul.f32 %v52_v17, %v25_v15 }
  0x13   :  { %v32_v20 = vsel %vm26_vm0, 0.0, %v29_v18 }
  0x14   :  { %47 = vst [vmem:[%s94_s1 + $0x2] sm:$0x3] %v32_v20  ;;  %v33_v21 = vsel %vm27_vm1, 0.0, %v31_v19 }
  0x15   :  { %48 = vst [vmem:[%s94_s1 + $0x6] sm:$0x3] %v33_v21 }

</bundles_post_ra>
